<compile_context>
chip_gen: v6e
topology: v6e:2x2x1
jax: 0.10.0
libtpu: 0.0.40
codegen_flags: <defaults>
</compile_context>

<pallas_src>
import jax
import jax.numpy as jnp
from jax.experimental import pallas as pl
from jax.experimental.pallas import tpu as pltpu


def _mlp_kernel(x_ref,
                w1_ref, b1_ref,
                w2_ref, b2_ref,
                w3_ref, b3_ref,
                w4_ref, b4_ref,
                w5_ref, b5_ref,
                w6_ref, b6_ref,
                o_ref):
    """One batch tile: full 6-layer MLP fused in VMEM (no HBM round-trips)."""

    def dense(h, w_ref, b_ref):
        # bf16 MXU inputs, f32 accumulation, f32 bias add (VPU epilogue).
        return jnp.dot(h.astype(w_ref.dtype), w_ref[...],
                       preferred_element_type=jnp.float32) + b_ref[...]

    # Cast the already-resident f32 tile to bf16 in-kernel (no wrapper cast).
    h = x_ref[...].astype(jnp.bfloat16)
    h = jnp.maximum(dense(h, w1_ref, b1_ref), 0.0)   # fc1 + relu1
    h = jnp.maximum(dense(h, w2_ref, b2_ref), 0.0)   # fc2 + relu2
    h = jnp.maximum(dense(h, w3_ref, b3_ref), 0.0)   # fc3 + relu3
    h = jnp.maximum(dense(h, w4_ref, b4_ref), 0.0)   # fc4 + relu4
    h = jnp.maximum(dense(h, w5_ref, b5_ref), 0.0)   # fc5 + relu5
    h = dense(h, w6_ref, b6_ref)                     # fc6 (no activation)

    o_ref[...] = h.astype(o_ref.dtype)               # bf16 lane-dense store


def _choose_batch_tile(batch, max_tb=1024):
    """Adaptive batch tile.

    - Small batches (<=256 rows): one tile of exactly 8*cdiv(batch,8) rows,
      so batch=8 runs an 8-row tile instead of a padded 256-row one.
    - Larger batches: split into >=2 grid steps (v7x dual-TC), tile capped at
      max_tb rows and aligned to 32 rows so every dtype's block layout is legal
      even when the block is not the full array.
    """
    rounded = 8 * pl.cdiv(batch, 8)
    if rounded <= 256:
        return rounded
    return min(max_tb, 32 * pl.cdiv(pl.cdiv(rounded, 2), 32))


def imitation_model_forward(x, params, *, out_dtype=jnp.float32):
    """x: [batch, input_size] f32; params: list of (W [in,out] f32, b [1,out] f32).

    Returns [batch, output_size] logits in `out_dtype` (default f32).
    """
    batch, input_size = x.shape
    output_size = params[-1][0].shape[1]

    # Feature dims of every layer boundary; pad all hidden/output dims to a
    # multiple of 128 (lane-dense activations, full-width MXU K/N).  The raw
    # input feature dim (K of fc1 only) is left as-is.
    dims = [input_size] + [w.shape[1] for w, _ in params]
    pdims = [dims[0]] + [128 * pl.cdiv(d, 128) for d in dims[1:]]

    tb = _choose_batch_tile(batch)
    padded_batch = tb * pl.cdiv(batch, tb)
    if padded_batch != batch:
        # TODO(synk): fold the batch pad into the kernel via a masked tail store.
        x = jnp.pad(x, ((0, padded_batch - batch), (0, 0)))

    resident = lambda i: (0, 0)          # weights/biases: same block every step
    x_spec = pl.BlockSpec((tb, input_size), lambda i: (i, 0))

    flat_args = [x]                      # f32 in; cast to bf16 inside the kernel
    in_specs = [x_spec]

    for li, (w, b) in enumerate(params):
        in_p, out_p = pdims[li], pdims[li + 1]
        # Zero-pad both the weight rows/cols and the bias entries -> exact math.
        w = jnp.pad(w, ((0, in_p - w.shape[0]), (0, out_p - w.shape[1])))
        b = jnp.pad(b, ((0, 0), (0, out_p - b.shape[1])))
        w = w.astype(jnp.bfloat16)       # MXU input dtype
        b = b.astype(jnp.float32)        # f32 epilogue
        flat_args.extend([w, b])
        in_specs.append(pl.BlockSpec(w.shape, resident))
        in_specs.append(pl.BlockSpec(b.shape, resident))

    # Advisory cost estimate for the XLA scheduler (padded shapes).
    flops = 2 * padded_batch * sum(a * b for a, b in zip(pdims[:-1], pdims[1:]))
    bytes_accessed = (x.size * x.dtype.itemsize
                      + sum(int(a.size) * a.dtype.itemsize for a in flat_args[1:])
                      + padded_batch * pdims[-1] * 2)     # bf16 output writeback

    out = pl.pallas_call(
        _mlp_kernel,
        out_shape=jax.ShapeDtypeStruct((padded_batch, pdims[-1]), jnp.bfloat16),
        grid=(padded_batch // tb,),
        in_specs=in_specs,
        out_specs=pl.BlockSpec((tb, pdims[-1]), lambda i: (i, 0)),
        compiler_params=pltpu.CompilerParams(
            dimension_semantics=("parallel",),
            vmem_limit_bytes=32 * 1024 * 1024),
        cost_estimate=pl.CostEstimate(flops=flops, transcendentals=0,
                                      bytes_accessed=bytes_accessed),
    )(*flat_args)

    return out[:batch, :output_size].astype(out_dtype)


def init_params(key, input_size, output_size):
    """Deterministic init matching PyTorch nn.Linear default (U(-1/sqrt(fan_in), +))."""
    sizes = [input_size, 64, 128, 256, 128, 64, output_size]
    params = []
    for i in range(len(sizes) - 1):
        fan_in, fan_out = sizes[i], sizes[i + 1]
        key, kw, kb = jax.random.split(key, 3)
        bound = 1.0 / jnp.sqrt(jnp.float32(fan_in))
        w = jax.random.uniform(kw, (fan_in, fan_out), jnp.float32, -bound, bound)
        b = jax.random.uniform(kb, (1, fan_out), jnp.float32, -bound, bound)
        params.append((w, b))
    return params


def reference_forward(x, params):
    """Plain-JAX reference mimicking the kernel's bf16-input / f32-accum math."""
    h = x
    n = len(params)
    for i, (w, b) in enumerate(params):
        h = jnp.dot(h.astype(jnp.bfloat16), w.astype(jnp.bfloat16),
                    preferred_element_type=jnp.float32) + b
        if i < n - 1:
            h = jnp.maximum(h, 0.0)
    return h


if __name__ == "__main__":
    key = jax.random.PRNGKey(0)

    batch = 8            # stands in for a mini-batch of X_train rows
    input_size = 16      # stands in for X_train.shape[1]
    output_size = 4      # stands in for torch.max(y_train) + 1

    key, kx = jax.random.split(key)
    x = jax.random.normal(kx, (batch, input_size), jnp.float32)

    params = init_params(key, input_size, output_size)

    out = imitation_model_forward(x, params)
    out = jax.block_until_ready(out)

    ref = reference_forward(x, params)
    assert out.shape == (batch, output_size), out.shape
    assert jnp.allclose(out, ref, atol=2e-2, rtol=2e-2), "mismatch vs reference"

    print("KERNEL_OK")
</pallas_src>

<mosaic_0001>
module attributes {stable_mosaic.version = 11 : i64} {
  func.func @_mlp_kernel(%arg0: i32, %arg1: memref<8x16xf32, #tpu.memory_space<vmem>>, %arg2: memref<16x128xbf16, #tpu.memory_space<vmem>>, %arg3: memref<1x128xf32, #tpu.memory_space<vmem>>, %arg4: memref<128x128xbf16, #tpu.memory_space<vmem>>, %arg5: memref<1x128xf32, #tpu.memory_space<vmem>>, %arg6: memref<128x256xbf16, #tpu.memory_space<vmem>>, %arg7: memref<1x256xf32, #tpu.memory_space<vmem>>, %arg8: memref<256x128xbf16, #tpu.memory_space<vmem>>, %arg9: memref<1x128xf32, #tpu.memory_space<vmem>>, %arg10: memref<128x128xbf16, #tpu.memory_space<vmem>>, %arg11: memref<1x128xf32, #tpu.memory_space<vmem>>, %arg12: memref<128x128xbf16, #tpu.memory_space<vmem>>, %arg13: memref<1x128xf32, #tpu.memory_space<vmem>>, %arg14: memref<8x128xbf16, #tpu.memory_space<vmem>>) attributes {dimension_semantics = [#tpu.dimension_semantics<parallel>], iteration_bounds = array<i64: 1>, scalar_prefetch = 0 : i64, scratch_operands = 0 : i64, tpu.core_type = #tpu.core_type<tc>, window_params = [{transform_indices = @transform_0, window_bounds = array<i64: 8, 16>}, {pipeline_mode = #tpu.pipeline_mode<synchronous>, transform_indices = @transform_1, window_bounds = array<i64: 16, 128>}, {pipeline_mode = #tpu.pipeline_mode<synchronous>, transform_indices = @transform_2, window_bounds = array<i64: 1, 128>}, {pipeline_mode = #tpu.pipeline_mode<synchronous>, transform_indices = @transform_3, window_bounds = array<i64: 128, 128>}, {pipeline_mode = #tpu.pipeline_mode<synchronous>, transform_indices = @transform_4, window_bounds = array<i64: 1, 128>}, {pipeline_mode = #tpu.pipeline_mode<synchronous>, transform_indices = @transform_5, window_bounds = array<i64: 128, 256>}, {pipeline_mode = #tpu.pipeline_mode<synchronous>, transform_indices = @transform_6, window_bounds = array<i64: 1, 256>}, {pipeline_mode = #tpu.pipeline_mode<synchronous>, transform_indices = @transform_7, window_bounds = array<i64: 256, 128>}, {pipeline_mode = #tpu.pipeline_mode<synchronous>, transform_indices = @transform_8, window_bounds = array<i64: 1, 128>}, {pipeline_mode = #tpu.pipeline_mode<synchronous>, transform_indices = @transform_9, window_bounds = array<i64: 128, 128>}, {pipeline_mode = #tpu.pipeline_mode<synchronous>, transform_indices = @transform_10, window_bounds = array<i64: 1, 128>}, {pipeline_mode = #tpu.pipeline_mode<synchronous>, transform_indices = @transform_11, window_bounds = array<i64: 128, 128>}, {pipeline_mode = #tpu.pipeline_mode<synchronous>, transform_indices = @transform_12, window_bounds = array<i64: 1, 128>}, {transform_indices = @transform_13, window_bounds = array<i64: 8, 128>}]} {
    %c0 = arith.constant 0 : index
    %c0_0 = arith.constant 0 : index
    %0 = vector.load %arg1[%c0, %c0_0] : memref<8x16xf32, #tpu.memory_space<vmem>>, vector<8x16xf32>
    %1 = arith.truncf %0 : vector<8x16xf32> to vector<8x16xbf16>
    %c0_1 = arith.constant 0 : index
    %c0_2 = arith.constant 0 : index
    %2 = vector.load %arg2[%c0_1, %c0_2] : memref<16x128xbf16, #tpu.memory_space<vmem>>, vector<16x128xbf16>
    %cst = arith.constant dense<0.000000e+00> : vector<8x128xf32>
    %3 = tpu.matmul %1, %2, %cst {dimension_numbers = #tpu.dot_dimension_numbers<[1], [0], [0], [1], [0, 0, 1, 1], [], []>} : vector<8x16xbf16>, vector<16x128xbf16>, vector<8x128xf32> -> vector<8x128xf32>
    %c0_3 = arith.constant 0 : index
    %c0_4 = arith.constant 0 : index
    %4 = vector.load %arg3[%c0_3, %c0_4] : memref<1x128xf32, #tpu.memory_space<vmem>>, vector<1x128xf32>
    %5 = vector.broadcast %4 : vector<1x128xf32> to vector<8x128xf32>
    %6 = arith.addf %3, %5 : vector<8x128xf32>
    %cst_5 = arith.constant 0.000000e+00 : f32
    %7 = vector.broadcast %cst_5 : f32 to vector<8x128xf32>
    %8 = arith.maximumf %6, %7 : vector<8x128xf32>
    %9 = arith.truncf %8 : vector<8x128xf32> to vector<8x128xbf16>
    %c0_6 = arith.constant 0 : index
    %c0_7 = arith.constant 0 : index
    %10 = vector.load %arg4[%c0_6, %c0_7] : memref<128x128xbf16, #tpu.memory_space<vmem>>, vector<128x128xbf16>
    %cst_8 = arith.constant dense<0.000000e+00> : vector<8x128xf32>
    %11 = tpu.matmul %9, %10, %cst_8 {dimension_numbers = #tpu.dot_dimension_numbers<[1], [0], [0], [1], [0, 0, 1, 1], [], []>} : vector<8x128xbf16>, vector<128x128xbf16>, vector<8x128xf32> -> vector<8x128xf32>
    %c0_9 = arith.constant 0 : index
    %c0_10 = arith.constant 0 : index
    %12 = vector.load %arg5[%c0_9, %c0_10] : memref<1x128xf32, #tpu.memory_space<vmem>>, vector<1x128xf32>
    %13 = vector.broadcast %12 : vector<1x128xf32> to vector<8x128xf32>
    %14 = arith.addf %11, %13 : vector<8x128xf32>
    %cst_11 = arith.constant 0.000000e+00 : f32
    %15 = vector.broadcast %cst_11 : f32 to vector<8x128xf32>
    %16 = arith.maximumf %14, %15 : vector<8x128xf32>
    %17 = arith.truncf %16 : vector<8x128xf32> to vector<8x128xbf16>
    %c0_12 = arith.constant 0 : index
    %c0_13 = arith.constant 0 : index
    %18 = vector.load %arg6[%c0_12, %c0_13] : memref<128x256xbf16, #tpu.memory_space<vmem>>, vector<128x256xbf16>
    %cst_14 = arith.constant dense<0.000000e+00> : vector<8x256xf32>
    %19 = tpu.matmul %17, %18, %cst_14 {dimension_numbers = #tpu.dot_dimension_numbers<[1], [0], [0], [1], [0, 0, 1, 1], [], []>} : vector<8x128xbf16>, vector<128x256xbf16>, vector<8x256xf32> -> vector<8x256xf32>
    %c0_15 = arith.constant 0 : index
    %c0_16 = arith.constant 0 : index
    %20 = vector.load %arg7[%c0_15, %c0_16] : memref<1x256xf32, #tpu.memory_space<vmem>>, vector<1x256xf32>
    %21 = vector.broadcast %20 : vector<1x256xf32> to vector<8x256xf32>
    %22 = arith.addf %19, %21 : vector<8x256xf32>
    %cst_17 = arith.constant 0.000000e+00 : f32
    %23 = vector.broadcast %cst_17 : f32 to vector<8x256xf32>
    %24 = arith.maximumf %22, %23 : vector<8x256xf32>
    %25 = arith.truncf %24 : vector<8x256xf32> to vector<8x256xbf16>
    %c0_18 = arith.constant 0 : index
    %c0_19 = arith.constant 0 : index
    %26 = vector.load %arg8[%c0_18, %c0_19] : memref<256x128xbf16, #tpu.memory_space<vmem>>, vector<256x128xbf16>
    %cst_20 = arith.constant dense<0.000000e+00> : vector<8x128xf32>
    %27 = tpu.matmul %25, %26, %cst_20 {dimension_numbers = #tpu.dot_dimension_numbers<[1], [0], [0], [1], [0, 0, 1, 1], [], []>} : vector<8x256xbf16>, vector<256x128xbf16>, vector<8x128xf32> -> vector<8x128xf32>
    %c0_21 = arith.constant 0 : index
    %c0_22 = arith.constant 0 : index
    %28 = vector.load %arg9[%c0_21, %c0_22] : memref<1x128xf32, #tpu.memory_space<vmem>>, vector<1x128xf32>
    %29 = vector.broadcast %28 : vector<1x128xf32> to vector<8x128xf32>
    %30 = arith.addf %27, %29 : vector<8x128xf32>
    %cst_23 = arith.constant 0.000000e+00 : f32
    %31 = vector.broadcast %cst_23 : f32 to vector<8x128xf32>
    %32 = arith.maximumf %30, %31 : vector<8x128xf32>
    %33 = arith.truncf %32 : vector<8x128xf32> to vector<8x128xbf16>
    %c0_24 = arith.constant 0 : index
    %c0_25 = arith.constant 0 : index
    %34 = vector.load %arg10[%c0_24, %c0_25] : memref<128x128xbf16, #tpu.memory_space<vmem>>, vector<128x128xbf16>
    %cst_26 = arith.constant dense<0.000000e+00> : vector<8x128xf32>
    %35 = tpu.matmul %33, %34, %cst_26 {dimension_numbers = #tpu.dot_dimension_numbers<[1], [0], [0], [1], [0, 0, 1, 1], [], []>} : vector<8x128xbf16>, vector<128x128xbf16>, vector<8x128xf32> -> vector<8x128xf32>
    %c0_27 = arith.constant 0 : index
    %c0_28 = arith.constant 0 : index
    %36 = vector.load %arg11[%c0_27, %c0_28] : memref<1x128xf32, #tpu.memory_space<vmem>>, vector<1x128xf32>
    %37 = vector.broadcast %36 : vector<1x128xf32> to vector<8x128xf32>
    %38 = arith.addf %35, %37 : vector<8x128xf32>
    %cst_29 = arith.constant 0.000000e+00 : f32
    %39 = vector.broadcast %cst_29 : f32 to vector<8x128xf32>
    %40 = arith.maximumf %38, %39 : vector<8x128xf32>
    %41 = arith.truncf %40 : vector<8x128xf32> to vector<8x128xbf16>
    %c0_30 = arith.constant 0 : index
    %c0_31 = arith.constant 0 : index
    %42 = vector.load %arg12[%c0_30, %c0_31] : memref<128x128xbf16, #tpu.memory_space<vmem>>, vector<128x128xbf16>
    %cst_32 = arith.constant dense<0.000000e+00> : vector<8x128xf32>
    %43 = tpu.matmul %41, %42, %cst_32 {dimension_numbers = #tpu.dot_dimension_numbers<[1], [0], [0], [1], [0, 0, 1, 1], [], []>} : vector<8x128xbf16>, vector<128x128xbf16>, vector<8x128xf32> -> vector<8x128xf32>
    %c0_33 = arith.constant 0 : index
    %c0_34 = arith.constant 0 : index
    %44 = vector.load %arg13[%c0_33, %c0_34] : memref<1x128xf32, #tpu.memory_space<vmem>>, vector<1x128xf32>
    %45 = vector.broadcast %44 : vector<1x128xf32> to vector<8x128xf32>
    %46 = arith.addf %43, %45 : vector<8x128xf32>
    %47 = arith.truncf %46 : vector<8x128xf32> to vector<8x128xbf16>
    %c0_35 = arith.constant 0 : index
    %c0_36 = arith.constant 0 : index
    %48 = vector.load %arg14[%c0_35, %c0_36] : memref<8x128xbf16, #tpu.memory_space<vmem>>, vector<8x128xbf16>
    tpu.vector_store %arg14[%c0_35, %c0_36], %47 {strides = array<i32>} : memref<8x128xbf16, #tpu.memory_space<vmem>>, vector<8x128xbf16>,
    return
  }
  func.func @transform_0(%arg0: i32) -> (i32, i32) {
    %c0_i32 = arith.constant 0 : i32
    %c0_i32_0 = arith.constant 0 : i32
    return %arg0, %c0_i32 : i32, i32
  }
  func.func @transform_1(%arg0: i32) -> (i32, i32) {
    %c0_i32 = arith.constant 0 : i32
    %c0_i32_0 = arith.constant 0 : i32
    %c0_i32_1 = arith.constant 0 : i32
    return %c0_i32, %c0_i32_0 : i32, i32
  }
  func.func @transform_2(%arg0: i32) -> (i32, i32) {
    %c0_i32 = arith.constant 0 : i32
    %c0_i32_0 = arith.constant 0 : i32
    %c0_i32_1 = arith.constant 0 : i32
    return %c0_i32, %c0_i32_0 : i32, i32
  }
  func.func @transform_3(%arg0: i32) -> (i32, i32) {
    %c0_i32 = arith.constant 0 : i32
    %c0_i32_0 = arith.constant 0 : i32
    %c0_i32_1 = arith.constant 0 : i32
    return %c0_i32, %c0_i32_0 : i32, i32
  }
  func.func @transform_4(%arg0: i32) -> (i32, i32) {
    %c0_i32 = arith.constant 0 : i32
    %c0_i32_0 = arith.constant 0 : i32
    %c0_i32_1 = arith.constant 0 : i32
    return %c0_i32, %c0_i32_0 : i32, i32
  }
  func.func @transform_5(%arg0: i32) -> (i32, i32) {
    %c0_i32 = arith.constant 0 : i32
    %c0_i32_0 = arith.constant 0 : i32
    %c0_i32_1 = arith.constant 0 : i32
    return %c0_i32, %c0_i32_0 : i32, i32
  }
  func.func @transform_6(%arg0: i32) -> (i32, i32) {
    %c0_i32 = arith.constant 0 : i32
    %c0_i32_0 = arith.constant 0 : i32
    %c0_i32_1 = arith.constant 0 : i32
    return %c0_i32, %c0_i32_0 : i32, i32
  }
  func.func @transform_7(%arg0: i32) -> (i32, i32) {
    %c0_i32 = arith.constant 0 : i32
    %c0_i32_0 = arith.constant 0 : i32
    %c0_i32_1 = arith.constant 0 : i32
    return %c0_i32, %c0_i32_0 : i32, i32
  }
  func.func @transform_8(%arg0: i32) -> (i32, i32) {
    %c0_i32 = arith.constant 0 : i32
    %c0_i32_0 = arith.constant 0 : i32
    %c0_i32_1 = arith.constant 0 : i32
    return %c0_i32, %c0_i32_0 : i32, i32
  }
  func.func @transform_9(%arg0: i32) -> (i32, i32) {
    %c0_i32 = arith.constant 0 : i32
    %c0_i32_0 = arith.constant 0 : i32
    %c0_i32_1 = arith.constant 0 : i32
    return %c0_i32, %c0_i32_0 : i32, i32
  }
  func.func @transform_10(%arg0: i32) -> (i32, i32) {
    %c0_i32 = arith.constant 0 : i32
    %c0_i32_0 = arith.constant 0 : i32
    %c0_i32_1 = arith.constant 0 : i32
    return %c0_i32, %c0_i32_0 : i32, i32
  }
  func.func @transform_11(%arg0: i32) -> (i32, i32) {
    %c0_i32 = arith.constant 0 : i32
    %c0_i32_0 = arith.constant 0 : i32
    %c0_i32_1 = arith.constant 0 : i32
    return %c0_i32, %c0_i32_0 : i32, i32
  }
  func.func @transform_12(%arg0: i32) -> (i32, i32) {
    %c0_i32 = arith.constant 0 : i32
    %c0_i32_0 = arith.constant 0 : i32
    %c0_i32_1 = arith.constant 0 : i32
    return %c0_i32, %c0_i32_0 : i32, i32
  }
  func.func @transform_13(%arg0: i32) -> (i32, i32) {
    %c0_i32 = arith.constant 0 : i32
    %c0_i32_0 = arith.constant 0 : i32
    return %arg0, %c0_i32 : i32, i32
  }
}

</mosaic_0001>

<bundles_post_ra>
// kernel: tpu_custom_call.1
= control target key start
LH: loop header
LB: loop body
LE: loop exit
PB: predicated region body
PF: predicated region fallthrough
CT: control target
= control target key end

     0   :  { %18 = vsyncpa [#allocation3], 0  ;;  %s1494_s0 = inlined_call_operand.hbm [shape: f32[8,16], index: 0, kind: input, shape index: {}]   ;;  %s1495_s1 = inlined_call_operand.hbm [shape: bf16[16,128], index: 1, kind: input, shape index: {}]   ;;  %s1496_s2 = inlined_call_operand.vmem [shape: f32[1,128], index: 2, kind: input, shape index: {}]   ;;  %s1497_s3 = inlined_call_operand.hbm [shape: bf16[128,128], index: 3, kind: input, shape index: {}]   ;;  %s1498_s4 = inlined_call_operand.vmem [shape: f32[1,128], index: 4, kind: input, shape index: {}]   ;;  %s1499_s5 = inlined_call_operand.hbm [shape: bf16[128,256], index: 5, kind: input, shape index: {}]   ;;  %s1500_s6 = inlined_call_operand.vmem [shape: f32[1,256], index: 6, kind: input, shape index: {}]   ;;  %s1501_s7 = inlined_call_operand.hbm [shape: bf16[256,128], index: 7, kind: input, shape index: {}]   ;;  %s1502_s8 = inlined_call_operand.vmem [shape: f32[1,128], index: 8, kind: input, shape index: {}]   ;;  %s1503_s9 = inlined_call_operand.hbm [shape: bf16[128,128], index: 9, kind: input, shape index: {}]   ;;  %s1504_s10 = inlined_call_operand.vmem [shape: f32[1,128], index: 10, kind: input, shape index: {}]   ;;  %s1505_s11 = inlined_call_operand.hbm [shape: bf16[128,128], index: 11, kind: input, shape index: {}]   ;;  %s1506_s12 = inlined_call_operand.vmem [shape: f32[1,128], index: 12, kind: input, shape index: {}]   ;;  %s1507_s13 = inlined_call_operand.hbm [shape: bf16[8,128], index: 13, kind: output, shape index: {}]  }
   0x1   :  { %19 = vsyncpa [#allocation6], 0 }
   0x2   :  { %20 = vsyncpa [#allocation9], 0 }
   0x3   :  { %21 = vsyncpa [#allocation12], 0 }
   0x4   :  { %22 = vsyncpa [#allocation4], 0  ;;  %s1319_s25 = smov [#allocation5]  }
   0x5   :  { %s38_s26 = sshll.u32 %s1319_s25, 4  ;;  %s39_s26 = int_to_ptr.vmem [resolvable:$true] %s38_s26 }
   0x6   :  { %s1157_s27 = scalar_lea.vmem %s39_s26, 128  ;;  %p1162_p1 = scmp.lt.s32.totalorder %s39_s26, %s39_s26 }
   0x7   :  { %p1158_p0 = scmp.ne.s32.totalorder %s39_s26, %s1157_s27  ;;  %p1163_p2 = scmp.lt.s32.totalorder %s1157_s27, %s1157_s27 }
   0x9   :  { %p1164_p3 = por %p1163_p2, %p1162_p1 }
   0xb   :  { %p1165_p4 = pnand %p1164_p3, %p1158_p0 }
   0xd   :  { %1168 = shalt.err (!%p1165_p4)
}
   0xe   :  { %s1320_s28 = smov 64   ;;  %s1321_s29 = smov 4  }
   0xf   :  { %44 = dma.hbm_to_vmem [thread:$0]  %s1495_s1, 128, %s39_s26, [#allocation6], %s1320_s28, %s1320_s28, %s1321_s29  }
  0x10   :  { %s1322_s15 = smov [#allocation8]  }
  0x11   :  { %s66_s16 = sshll.u32 %s1322_s15, 4  ;;  %s67_s16 = int_to_ptr.vmem [resolvable:$true] %s66_s16 }
  0x12   :  { %s1177_s17 = scalar_lea.vmem %s67_s16, 2048  ;;  %p1182_p6 = scmp.lt.s32.totalorder %s67_s16, %s67_s16 }
  0x13   :  { %p1178_p5 = scmp.ne.s32.totalorder %s67_s16, %s1177_s17  ;;  %p1183_p7 = scmp.lt.s32.totalorder %s1177_s17, %s1177_s17 }
  0x15   :  { %p1184_p8 = por %p1183_p7, %p1182_p6 }
  0x17   :  { %p1185_p9 = pnand %p1184_p8, %p1178_p5 }
  0x19   :  { %1188 = shalt.err (!%p1185_p9)
}
  0x1a   :  { %s1323_s18 = smov 128   ;;  %s1324_s19 = smov 8  }
  0x1b   :  { %72 = dma.hbm_to_vmem [thread:$0]  %s1499_s5, 2048, %s67_s16, [#allocation9], %s1323_s18, %s1323_s18, %s1324_s19  }
  0x1c   :  { %s1325_s22 = smov [#allocation11]   ;;  %s1326_s24 = smov [#allocation2]  }
  0x1d   :  { %s94_s23 = sshll.u32 %s1325_s22, 4  ;;  %s29_s1 = sshll.u32 %s1326_s24, 4  ;;  %s95_s23 = int_to_ptr.vmem [resolvable:$true] %s94_s23  ;;  %s30_s1 = int_to_ptr.vmem [resolvable:$true] %s29_s1 }
  0x1e   :  { %s1197_s25 = scalar_lea.vmem %s95_s23, 1024  ;;  %p1202_p11 = scmp.lt.s32.totalorder %s95_s23, %s95_s23 }
  0x1f   :  { %p1198_p10 = scmp.ne.s32.totalorder %s95_s23, %s1197_s25  ;;  %p1203_p12 = scmp.lt.s32.totalorder %s1197_s25, %s1197_s25 }
  0x21   :  { %p1204_p13 = por %p1203_p12, %p1202_p11 }
  0x23   :  { %p1205_p0 = pnand %p1204_p13, %p1198_p10 }
  0x25   :  { %1208 = shalt.err (!%p1205_p0)
}
  0x26   :  { %100 = dma.hbm_to_vmem [thread:$0]  %s1503_s9, 1024, %s95_s23, [#allocation12], %s1320_s28, %s1320_s28, %s1321_s29  }
  0x27   :  { %s1217_s5 = scalar_lea.vmem %s30_s1, 128  ;;  %p1222_p2 = scmp.lt.s32.totalorder %s30_s1, %s30_s1 }
  0x28   :  { %p1218_p1 = scmp.ne.s32.totalorder %s30_s1, %s1217_s5  ;;  %p1223_p3 = scmp.lt.s32.totalorder %s1217_s5, %s1217_s5 }
  0x2a   :  { %p1224_p4 = por %p1223_p3, %p1222_p2 }
  0x2c   :  { %p1225_p5 = pnand %p1224_p4, %p1218_p1 }
  0x2e   :  { %1228 = shalt.err (!%p1225_p5)
}
  0x2f   :  { %32 = dma.hbm_to_vmem [thread:$0]  %s1494_s0, 128, %s30_s1, [#allocation3]  }
  0x30   :  { %s1327_s15 = smov [#allocation7]   ;;  %s1328_s17 = smov [#allocation10]  }
  0x31   :  { %s52_s16 = sshll.u32 %s1327_s15, 4  ;;  %s80_s18 = sshll.u32 %s1328_s17, 4  ;;  %s53_s16 = int_to_ptr.vmem [resolvable:$true] %s52_s16  ;;  %s81_s18 = int_to_ptr.vmem [resolvable:$true] %s80_s18 }
  0x32   :  { %s1237_s19 = scalar_lea.vmem %s53_s16, 1024  ;;  %p1242_p7 = scmp.lt.s32.totalorder %s53_s16, %s53_s16 }
  0x33   :  { %p1238_p6 = scmp.ne.s32.totalorder %s53_s16, %s1237_s19  ;;  %p1243_p8 = scmp.lt.s32.totalorder %s1237_s19, %s1237_s19 }
  0x35   :  { %p1244_p9 = por %p1243_p8, %p1242_p7 }
  0x37   :  { %p1245_p10 = pnand %p1244_p9, %p1238_p6 }
  0x39   :  { %1248 = shalt.err (!%p1245_p10)
}
  0x3a   :  { %58 = dma.hbm_to_vmem [thread:$0]  %s1497_s3, 1024, %s53_s16, [#allocation6], %s1320_s28, %s1320_s28, %s1321_s29  }
  0x3b   :  { %s1257_s0 = scalar_lea.vmem %s81_s18, 2048  ;;  %p1262_p12 = scmp.lt.s32.totalorder %s81_s18, %s81_s18 }
  0x3c   :  { %p1258_p11 = scmp.ne.s32.totalorder %s81_s18, %s1257_s0  ;;  %p1263_p13 = scmp.lt.s32.totalorder %s1257_s0, %s1257_s0 }
  0x3e   :  { %p1264_p0 = por %p1263_p13, %p1262_p12 }
  0x40   :  { %p1265_p1 = pnand %p1264_p0, %p1258_p11 }
  0x42   :  { %1268 = shalt.err (!%p1265_p1)
}
  0x43   :  { %86 = dma.hbm_to_vmem [thread:$0]  %s1501_s7, 2048, %s81_s18, [#allocation9], %s1320_s28, %s1320_s28, %s1321_s29  }
  0x44   :  { %s1329_s23 = smov [#allocation13]  }
  0x45   :  { %s108_s24 = sshll.u32 %s1329_s23, 4  ;;  %s109_s24 = int_to_ptr.vmem [resolvable:$true] %s108_s24 }
  0x46   :  { %s1277_s1 = scalar_lea.vmem %s109_s24, 1024  ;;  %p1282_p3 = scmp.lt.s32.totalorder %s109_s24, %s109_s24 }
  0x47   :  { %p1278_p2 = scmp.ne.s32.totalorder %s109_s24, %s1277_s1  ;;  %p1283_p4 = scmp.lt.s32.totalorder %s1277_s1, %s1277_s1 }
  0x49   :  { %p1284_p5 = por %p1283_p4, %p1282_p3 }
  0x4b   :  { %p1285_p6 = pnand %p1284_p5, %p1278_p2 }
  0x4d   :  { %1288 = shalt.err (!%p1285_p6)
}
  0x4e   :  { %114 = dma.hbm_to_vmem [thread:$0]  %s1505_s11, 1024, %s109_s24, [#allocation12], %s1320_s28, %s1320_s28, %s1321_s29  }
  0x4f   :  { %1309 = dma.done.wait [#allocation3], 128  }
  0x50   :  { %1310 = vsyncadd [#allocation3], 4294967168 }
  0x51   :  { %1311 = dma.done.wait [#allocation6], 1152  }
  0x52   :  { %1312 = vsyncadd [#allocation6], 4294966144 }
  0x53   :  { %1313 = dma.done.wait [#allocation9], 4096  }
  0x54   :  { %1314 = vsyncadd [#allocation9], 4294963200 }
  0x55   :  { %1315 = dma.done.wait [#allocation12], 2048  }
  0x56   :  { %1316 = vsyncadd [#allocation12], 4294965248  ;;  %v1330_v0 = vmov 0.0   ;;  %vm1331_vm0 = vmmov 0   ;;  %v1084_v1 = vld [vmem:[#allocation5] sm:$0xff]   ;;  %v139_v2 = vld [vmem:[#allocation2] sm:$0xff] }
  0x57   :  { %1003 = vmatprep.subr.bf16.mxu0 %v1330_v0  ;;  %1005 = vmatprep.mubr.msk.bf16.mxu0 %vm1331_vm0, %v1330_v0  ;;  %v140_v3 = vpack.c.bf16 %v139_v2, %v139_v2  ;;  %vm156_vm1 = vcmask 130048   ;;  %v1085_v4 = vld [vmem:[#allocation7 + $0x38] sm:$0xff]   ;;  %v1086_v5 = vld [vmem:[#allocation7 + $0x30] sm:$0xff]   ;;  %v1087_v6 = vld [vmem:[#allocation7 + $0x28] sm:$0xff]   ;;  %v1332_v36 = vmov 0   ;;  %s1333_s14 = smov [#allocation14]  }
  0x58   :  { %1009 = vmatprep.subr.bf16.mxu1 %v1330_v0  ;;  %1025 = vmatprep.mubr.msk.bf16.mxu1 %vm1331_vm0, %v1330_v0  ;;  %v1088_v7 = vld [vmem:[#allocation7 + $0x20] sm:$0xff]   ;;  %v1089_v8 = vld [vmem:[#allocation7 + $0x18] sm:$0xff]   ;;  %v1090_v9 = vld [vmem:[#allocation7 + $0x10] sm:$0xff]   ;;  %s877_s15 = sshll.u32 %s1333_s14, 4  ;;  %s878_s15 = int_to_ptr.vmem [resolvable:$true] %s877_s15 }
  0x59   :  { %1004 = vmatpush3.bf16.msra.mxu0 %v1084_v1  ;;  %1010 = vmatpush3.bf16.msra.mxu1 %v1085_v4  ;;  %v1091_v10 = vld [vmem:[#allocation7 + $0x8] sm:$0xff]   ;;  %v1092_v11 = vld [vmem:[#allocation7] sm:$0xff]   ;;  %v1093_v12 = vld [vmem:[#allocation8 + $0x70] ss:$8 sps:$4 sm:$0xff]   ;;  %p1294_p8 = scmp.lt.s32.totalorder %s878_s15, %s878_s15 }
  0x5a   :  { %1011 = vmatprep.subr.bf16.mxu1 %v1330_v0  ;;  %v1095_v13 = vld [vmem:[#allocation8 + $0x74] ss:$8 sps:$4 sm:$0xff]   ;;  %v1098_v14 = vld [vmem:[#allocation8 + $0x64] ss:$8 sps:$4 sm:$0xff]   ;;  %v1096_v15 = vld [vmem:[#allocation8 + $0x60] ss:$8 sps:$4 sm:$0xff]  }
  0x5b   :  { %423 = vmatprep.subr.bf16.mxu0 %v1095_v13  ;;  %v1101_v16 = vld [vmem:[#allocation8 + $0x54] ss:$8 sps:$4 sm:$0xff]   ;;  %v1099_v17 = vld [vmem:[#allocation8 + $0x50] ss:$8 sps:$4 sm:$0xff]   ;;  %v1104_v18 = vld [vmem:[#allocation8 + $0x44] ss:$8 sps:$4 sm:$0xff]  }
  0x5c   :  { %1006 = vmatmul.mubr.msk.bf16.vlgmr.msra.gmra.mxu0 %vm156_vm1, %v140_v3  ;;  %v1102_v19 = vld [vmem:[#allocation8 + $0x40] ss:$8 sps:$4 sm:$0xff]   ;;  %v1107_v20 = vld [vmem:[#allocation8 + $0x34] ss:$8 sps:$4 sm:$0xff]   ;;  %v1105_v21 = vld [vmem:[#allocation8 + $0x30] ss:$8 sps:$4 sm:$0xff]   ;;  %v333_v3 = vlaneseq }
  0x5d   :  { %1012 = vmatpush3.bf16.msra.mxu1 %v1086_v5  ;;  %424 = vmatpush1.bf16.msra.mxu0 %v1093_v12  ;;  %v1110_v22 = vld [vmem:[#allocation8 + $0x24] ss:$8 sps:$4 sm:$0xff]   ;;  %v1108_v23 = vld [vmem:[#allocation8 + $0x20] ss:$8 sps:$4 sm:$0xff]   ;;  %v1113_v24 = vld [vmem:[#allocation8 + $0x14] ss:$8 sps:$4 sm:$0xff]  }
  0x5e   :  { %1013 = vmatprep.subr.bf16.mxu1 %v1330_v0  ;;  %425 = vmatprep.subr.bf16.mxu0 %v1098_v14  ;;  %v1111_v25 = vld [vmem:[#allocation8 + $0x10] ss:$8 sps:$4 sm:$0xff]   ;;  %v1116_v34 = vld [vmem:[#allocation8 + $0x4] ss:$8 sps:$4 sm:$0xff]   ;;  %v1114_v35 = vld [vmem:[#allocation8] ss:$8 sps:$4 sm:$0xff]  }
  0x5f   :  { %v889_v26 = vld [vmem:[%s1496_s2] ss:$0 sm:$0xff]  ;;  %455 = vmatprep.mubr.bf16.mxu0 %v1332_v36  ;;  %v1117_v37 = vld [vmem:[#allocation10 + $0x78] sm:$0xff]   ;;  %v1121_v41 = vld [vmem:[#allocation10 + $0x68] sm:$0xff]   ;;  %v334_v4 = vshrl.u32 %v333_v3, 7 }
  0x60   :  { %v1118_v38 = vld [vmem:[#allocation10 + $0x38] sm:$0xff]   ;;  %v1119_v39 = vld [vmem:[#allocation10 + $0x70] sm:$0xff]   ;;  %v1122_v42 = vld [vmem:[#allocation10 + $0x28] sm:$0xff]  }
  0x61   :  { %1014 = vmatpush3.bf16.msra.mxu1 %v1087_v6  ;;  %426 = vmatpush1.bf16.msra.mxu0 %v1096_v15  ;;  %v1120_v40 = vld [vmem:[#allocation10 + $0x30] sm:$0xff]   ;;  %v1123_v43 = vld [vmem:[#allocation10 + $0x60] sm:$0xff]   ;;  %v1125_v45 = vld [vmem:[#allocation10 + $0x58] sm:$0xff]   ;;  %v335_v5 = vsub.s32 0, %v334_v4 }
  0x62   :  { %1015 = vmatprep.subr.bf16.mxu1 %v1330_v0  ;;  %427 = vmatprep.subr.bf16.mxu0 %v1101_v16  ;;  %v1124_v44 = vld [vmem:[#allocation10 + $0x20] sm:$0xff]   ;;  %v1126_v46 = vld [vmem:[#allocation10 + $0x18] sm:$0xff]   ;;  %v1127_v47 = vld [vmem:[#allocation10 + $0x50] sm:$0xff]  }
  0x63   :  { %v1128_v48 = vld [vmem:[#allocation10 + $0x10] sm:$0xff]   ;;  %v1129_v57 = vld [vmem:[#allocation10 + $0x48] sm:$0xff]   ;;  %v1131_v59 = vld [vmem:[#allocation10 + $0x40] sm:$0xff]  }
  0x64   :  { %v892_v49 = vld [vmem:[%s1498_s4] ss:$0 sm:$0xff]  ;;  %v1130_v58 = vld [vmem:[#allocation10 + $0x8] sm:$0xff]   ;;  %v1132_v60 = vld [vmem:[#allocation10] sm:$0xff]  }
  0x65   :  { %1016 = vmatpush3.bf16.msra.mxu1 %v1088_v7  ;;  %428 = vmatpush1.bf16.msra.mxu0 %v1099_v17  ;;  %v1133_v61 = vld [vmem:[#allocation11 + $0x38] sm:$0xff]   ;;  %v1134_v62 = vld [vmem:[#allocation11 + $0x30] sm:$0xff]   ;;  %v1135_v63 = vld [vmem:[#allocation11 + $0x28] sm:$0xff]   ;;  %v339_v7 = vsub.s32 1, %v334_v4 }
  0x66   :  { %1017 = vmatprep.subr.bf16.mxu1 %v1330_v0  ;;  %429 = vmatprep.subr.bf16.mxu0 %v1104_v18  ;;  %v1136_v1 = vld [vmem:[#allocation11 + $0x20] sm:$0xff]   ;;  %v1137_v2 = vld [vmem:[#allocation11 + $0x18] sm:$0xff]   ;;  %v331_v6 = vld [vmem:[%s1500_s6] sm:$0x3] }
  0x69   :  { %1018 = vmatpush3.bf16.msra.mxu1 %v1089_v8  ;;  %430 = vmatpush1.bf16.msra.mxu0 %v1102_v19  ;;  %v336_v8 = vrot.slane %v331_v6, %v335_v5 }
  0x6a   :  { %1019 = vmatprep.subr.bf16.mxu1 %v1330_v0  ;;  %431 = vmatprep.subr.bf16.mxu0 %v1107_v20  ;;  %v1138_v20 = vld [vmem:[#allocation11 + $0x10] sm:$0xff]  }
  0x6d   :  { %1020 = vmatpush3.bf16.msra.mxu1 %v1090_v9  ;;  %432 = vmatpush1.bf16.msra.mxu0 %v1105_v21  ;;  %v340_v9 = vrot.slane %v331_v6, %v339_v7  ;;  %v1139_v21 = vld [vmem:[#allocation11 + $0x8] sm:$0xff]  }
  0x6e   :  { %1021 = vmatprep.subr.bf16.mxu1 %v1330_v0  ;;  %433 = vmatprep.subr.bf16.mxu0 %v1110_v22  ;;  %v1140_v22 = vld [vmem:[#allocation11] sm:$0xff]  }
  0x71   :  { %1022 = vmatpush3.bf16.msra.mxu1 %v1091_v10  ;;  %434 = vmatpush1.bf16.msra.mxu0 %v1108_v23  ;;  %v1141_v23 = vld [vmem:[#allocation13 + $0x38] sm:$0xff]  }
  0x72   :  { %1023 = vmatprep.subr.bf16.mxu1 %v1330_v0  ;;  %435 = vmatprep.subr.bf16.mxu0 %v1113_v24  ;;  %v1142_v24 = vld [vmem:[#allocation13 + $0x30] sm:$0xff]  }
  0x75   :  { %1024 = vmatpush3.bf16.msra.mxu1 %v1092_v11  ;;  %436 = vmatpush1.bf16.msra.mxu0 %v1111_v25  ;;  %v1143_v25 = vld [vmem:[#allocation13 + $0x28] sm:$0xff]  }
  0x76   :  { %437 = vmatprep.subr.bf16.mxu0 %v1116_v34  ;;  %963 = vmatprep.subr.bf16.mxu1 %v1117_v37 }
  0x79   :  { %438 = vmatpush1.bf16.msra.mxu0 %v1114_v35 }
  0x7a   :  { %1029 = vmatprep.subr.bf16.mxu0 %v1330_v0 }
 0x11c   :  { %v194_v27 = vpop.f32.mrf.mxu0 }
 0x11d   :  { %v195_v28 = vadd.f32 %v889_v26, %v194_v27  ;;  %v1144_v26 = vld [vmem:[#allocation13 + $0x20] sm:$0xff]   ;;  %v1145_v27 = vld [vmem:[#allocation13 + $0x18] sm:$0xff]  }
 0x11e   :  { %v1007_v29 = vpop.f32.mrf.mxu0 }
 0x11f   :  { %v200_v30 = vmax.f32 %v195_v28, 0.0  ;;  %v1146_v28 = vld [vmem:[#allocation13 + $0x10] sm:$0xff]  }
 0x120   :  { %v197_v31 = vpop.f32.mrf.mxu0 }
 0x121   :  { %v201_v32 = vpack.c.bf16 %v200_v30, %v200_v30  ;;  %v917_v30 = vld [vmem:[%s1502_s8] ss:$0 sm:$0xff] }
 0x122   :  { %v1008_v33 = vpop.f32.mrf.mxu0 }
 0x123   :  { %1026 = vmatmul.mubr.bf16.vlgmr.msra.gmra.mxu1 %v201_v32 }
 0x124   :  { %964 = vmatpush3.bf16.msra.mxu1 %v1118_v38  ;;  %v1147_v38 = vld [vmem:[#allocation13 + $0x8] sm:$0xff]  }
 0x125   :  { %965 = vmatprep.subr.bf16.mxu1 %v1119_v39  ;;  %v1148_v39 = vld [vmem:[#allocation13] sm:$0xff]  }
 0x128   :  { %966 = vmatpush3.bf16.msra.mxu1 %v1120_v40  ;;  %v934_v40 = vld [vmem:[%s1504_s10] ss:$0 sm:$0xff]  ;;  %s1289_s10 = scalar_lea.vmem %s878_s15, 64 }
 0x129   :  { %967 = vmatprep.subr.bf16.mxu1 %v1121_v41  ;;  %p1290_p7 = scmp.ne.s32.totalorder %s878_s15, %s1289_s10  ;;  %p1295_p9 = scmp.lt.s32.totalorder %s1289_s10, %s1289_s10 }
 0x12b   :  { %p1296_p10 = por %p1295_p9, %p1294_p8 }
 0x12c   :  { %968 = vmatpush3.bf16.msra.mxu1 %v1122_v42 }
 0x12d   :  { %969 = vmatprep.subr.bf16.mxu1 %v1123_v43  ;;  %p1297_p11 = pnand %p1296_p10, %p1290_p7 }
 0x130   :  { %970 = vmatpush3.bf16.msra.mxu1 %v1124_v44 }
 0x131   :  { %971 = vmatprep.subr.bf16.mxu1 %v1125_v45 }
 0x134   :  { %972 = vmatpush3.bf16.msra.mxu1 %v1126_v46 }
 0x135   :  { %973 = vmatprep.subr.bf16.mxu1 %v1127_v47 }
 0x138   :  { %974 = vmatpush3.bf16.msra.mxu1 %v1128_v48  ;;  %v943_v48 = vld [vmem:[%s1506_s12] ss:$0 sm:$0xff] }
 0x139   :  { %975 = vmatprep.subr.bf16.mxu1 %v1129_v57 }
 0x13c   :  { %976 = vmatpush3.bf16.msra.mxu1 %v1130_v58 }
 0x13d   :  { %977 = vmatprep.subr.bf16.mxu1 %v1131_v59 }
 0x140   :  { %978 = vmatpush3.bf16.msra.mxu1 %v1132_v60 }
 0x141   :  { %1049 = vmatprep.subr.bf16.mxu1 %v1330_v0 }
 0x1e3   :  { %v307_v50 = vpop.f32.mrf.mxu1 }
 0x1e4   :  { %v308_v51 = vadd.f32 %v892_v49, %v307_v50 }
 0x1e5   :  { %v1027_v52 = vpop.f32.mrf.mxu1 }
 0x1e6   :  { %v313_v53 = vmax.f32 %v308_v51, 0.0 }
 0x1e7   :  { %v310_v54 = vpop.f32.mrf.mxu1 }
 0x1e8   :  { %v314_v55 = vpack.c.bf16 %v313_v53, %v313_v53 }
 0x1e9   :  { %v1028_v56 = vpop.f32.mrf.mxu1 }
 0x1ea   :  { %456 = vmatmul.mubr.bf16.vlgmr.msra.gmra.mxu0 %v314_v55 }
 0x1eb   :  { %1045 = vmatprep.mubr.msk.bf16.mxu0 %vm1331_vm0, %v1330_v0  ;;  %1030 = vmatpush3.bf16.msra.mxu0 %v1133_v61 }
 0x1ec   :  { %1031 = vmatprep.subr.bf16.mxu0 %v1330_v0 }
 0x1ef   :  { %1032 = vmatpush3.bf16.msra.mxu0 %v1134_v62 }
 0x1f0   :  { %1033 = vmatprep.subr.bf16.mxu0 %v1330_v0 }
 0x1f3   :  { %1034 = vmatpush3.bf16.msra.mxu0 %v1135_v63 }
 0x1f4   :  { %1035 = vmatprep.subr.bf16.mxu0 %v1330_v0 }
 0x1f7   :  { %1036 = vmatpush3.bf16.msra.mxu0 %v1136_v1 }
 0x1f8   :  { %1037 = vmatprep.subr.bf16.mxu0 %v1330_v0 }
 0x1fb   :  { %1038 = vmatpush3.bf16.msra.mxu0 %v1137_v2 }
 0x1fc   :  { %1039 = vmatprep.subr.bf16.mxu0 %v1330_v0 }
 0x1ff   :  { %1040 = vmatpush3.bf16.msra.mxu0 %v1138_v20 }
 0x200   :  { %1041 = vmatprep.subr.bf16.mxu0 %v1330_v0 }
 0x203   :  { %1042 = vmatpush3.bf16.msra.mxu0 %v1139_v21 }
 0x204   :  { %1043 = vmatprep.subr.bf16.mxu0 %v1330_v0 }
 0x207   :  { %1044 = vmatpush3.bf16.msra.mxu0 %v1140_v22 }
 0x2aa   :  { %v457_v10 = vpop.f32.mrf.mxu0 }
 0x2ab   :  { %v458_v11 = vadd.f32 %v457_v10, %v336_v8 }
 0x2ac   :  { %v459_v12 = vpop.f32.mrf.mxu0 }
 0x2ad   :  { %v460_v13 = vadd.f32 %v459_v12, %v340_v9  ;;  %v464_v14 = vmax.f32 %v458_v11, 0.0 }
 0x2ae   :  { %v461_v15 = vpop.f32.mrf.mxu0 }
 0x2af   :  { %v465_v16 = vmax.f32 %v460_v13, 0.0  ;;  %v466_v19 = vpack.c.bf16 %v464_v14, %v464_v14 }
 0x2b0   :  { %v462_v17 = vpop.f32.mrf.mxu0 }
 0x2b1   :  { %v467_v18 = vpack.c.bf16 %v465_v16, %v465_v16 }
 0x2b3   :  { %635 = vmatprep.mubr.bf16.mxu1 %v467_v18 }
 0x2b4   :  { %636 = vmatmul.mubr.bf16.vlgmr.msra.gmra.mxu1 %v466_v19 }
 0x2b5   :  { %1065 = vmatprep.mubr.msk.bf16.mxu1 %vm1331_vm0, %v1330_v0  ;;  %1050 = vmatpush3.bf16.msra.mxu1 %v1141_v23 }
 0x2b6   :  { %1051 = vmatprep.subr.bf16.mxu1 %v1330_v0 }
 0x2b9   :  { %1052 = vmatpush3.bf16.msra.mxu1 %v1142_v24 }
 0x2ba   :  { %1053 = vmatprep.subr.bf16.mxu1 %v1330_v0 }
 0x2bd   :  { %1054 = vmatpush3.bf16.msra.mxu1 %v1143_v25 }
 0x2be   :  { %1055 = vmatprep.subr.bf16.mxu1 %v1330_v0 }
 0x2c1   :  { %1056 = vmatpush3.bf16.msra.mxu1 %v1144_v26 }
 0x2c2   :  { %1057 = vmatprep.subr.bf16.mxu1 %v1330_v0 }
 0x2c5   :  { %1058 = vmatpush3.bf16.msra.mxu1 %v1145_v27 }
 0x2c6   :  { %1059 = vmatprep.subr.bf16.mxu1 %v1330_v0 }
 0x2c9   :  { %1060 = vmatpush3.bf16.msra.mxu1 %v1146_v28 }
 0x2ca   :  { %1061 = vmatprep.subr.bf16.mxu1 %v1330_v0 }
 0x2cd   :  { %1062 = vmatpush3.bf16.msra.mxu1 %v1147_v38 }
 0x2ce   :  { %1063 = vmatprep.subr.bf16.mxu1 %v1330_v0 }
 0x2d1   :  { %1064 = vmatpush3.bf16.msra.mxu1 %v1148_v39 }
 0x374   :  { %v979_v29 = vpop.f32.mrf.mxu1 }
 0x376   :  { %v980_v31 = vpop.f32.mrf.mxu1 }
 0x377   :  { %v981_v32 = vadd.f32 %v980_v31, %v979_v29 }
 0x378   :  { %v982_v33 = vpop.f32.mrf.mxu1 }
 0x379   :  { %v638_v34 = vadd.f32 %v981_v32, %v917_v30 }
 0x37a   :  { %v983_v35 = vpop.f32.mrf.mxu1 }
 0x37b   :  { %v643_v36 = vmax.f32 %v638_v34, 0.0 }
 0x37d   :  { %v644_v37 = vpack.c.bf16 %v643_v36, %v643_v36 }
 0x37f   :  { %1046 = vmatmul.mubr.bf16.vlgmr.msra.gmra.mxu0 %v644_v37 }
 0x43f   :  { %v750_v41 = vpop.f32.mrf.mxu0 }
 0x440   :  { %v751_v42 = vadd.f32 %v934_v40, %v750_v41 }
 0x441   :  { %v1047_v43 = vpop.f32.mrf.mxu0 }
 0x442   :  { %v756_v44 = vmax.f32 %v751_v42, 0.0 }
 0x443   :  { %v753_v45 = vpop.f32.mrf.mxu0 }
 0x444   :  { %v757_v46 = vpack.c.bf16 %v756_v44, %v756_v44 }
 0x445   :  { %v1048_v47 = vpop.f32.mrf.mxu0 }
 0x446   :  { %1066 = vmatmul.mubr.bf16.vlgmr.msra.gmra.mxu1 %v757_v46 }
 0x506   :  { %v863_v49 = vpop.f32.mrf.mxu1 }
 0x507   :  { %v864_v0 = vadd.f32 %v943_v48, %v863_v49 }
 0x508   :  { %v1067_v50 = vpop.f32.mrf.mxu1 }
 0x509   :  { %v869_v51 = vpack.c.bf16 %v864_v0, %v864_v0 }
 0x50a   :  { %v866_v52 = vpop.f32.mrf.mxu1 }
 0x50b   :  { %870 = vst [vmem:[#allocation14] sm:$0xf] %v869_v51 }
 0x50c   :  { %v1068_v53 = vpop.f32.mrf.mxu1 }
 0x50d   :  { %1300 = shalt.err (!%p1297_p11)
}
 0x50e   :  { %880 = dma.vmem_to_hbm [thread:$0]  %s878_s15, 64, %s1507_s13, [#allocation4]  }
 0x50f   :  { %1317 = dma.done.wait [#allocation4], 64  }
 0x510   :  { %1318 = vsyncadd [#allocation4], 4294967232 }
 0x511   :  { %884 = vsyncpa [#allocation3], 1 }
 0x512   :  { %885 = vsyncpa [#allocation6], 1 }
 0x513   :  { %886 = vsyncpa [#allocation9], 1 }
 0x514   :  { %887 = vsyncpa [#allocation12], 1 }
 0x515   :  { %888 = vsyncpa [#allocation4], 1 }

</bundles_post_ra>
